<compile_context>
chip_gen: v7x
topology: tpu7x:2x2x1
jax: 0.10.0
libtpu: 0.0.40
codegen_flags: <defaults>
</compile_context>

<pallas_src>
import math

import jax
import jax.numpy as jnp
from jax.experimental import pallas as pl
from jax.experimental.pallas import tpu as pltpu


_VMEM_BUDGET_BYTES = 10 * 1024 * 1024
_TILE_CANDIDATES = (2048, 1024, 512, 256, 128, 64, 32, 16, 8)


def _round_up(x, m):
    return ((x + m - 1) // m) * m


def _choose_tiling(F, bytes_per_group):
    """Pick (T, G_pad): sublane tile T and padded 128-lane group count."""
    G = _round_up(max(F, 1), 128) // 128          # number of 128-lane groups
    t_budget = max(8, (_VMEM_BUDGET_BYTES // max(bytes_per_group, 1)) // 8 * 8)

    # Single-block fast path: block sublane dim equals the full array dim, which is
    # always a legal block shape — avoids any sublane padding for small inputs.
    if G <= t_budget:
        return G, G

    G8 = _round_up(G, 8)                          # sublane-align for tiling
    T = 8
    for t in _TILE_CANDIDATES:
        # largest tile that fits the VMEM budget and pads G by <= ~12.5%
        if t <= t_budget and ((-G8) % t) <= G8 // 8:
            T = t
            break
    G_pad = _round_up(G8, T)
    return T, G_pad


# ---------------------------------------------------------------------------
# Kernels
# ---------------------------------------------------------------------------

def _wmse_reduce_kernel(pred_ref, tgt_ref, out_ref, acc_ref):
    """Accumulate (pred - tgt)^2 elementwise; reduce sublanes only at finalize."""
    i = pl.program_id(1)

    @pl.when(i == 0)
    def _init():
        acc_ref[...] = jnp.zeros_like(acc_ref)

    diff = pred_ref[...].astype(jnp.float32) - tgt_ref[...].astype(jnp.float32)
    acc_ref[...] += diff * diff          # VPU-only hot loop

    @pl.when(i == pl.num_programs(1) - 1)
    def _finalize():
        # Sublane (T) reduction once per super block -> lane-dense (B, 128) partial.
        # Lane/batch reduction, weighting and scaling happen in the wrapper.
        out_ref[...] = jnp.sum(acc_ref[...], axis=1)


def _wmse_none_kernel(pred_ref, tgt_ref, w_ref, out_ref):
    """Per-element weighted squared error (reduction='none')."""
    diff = pred_ref[...].astype(jnp.float32) - tgt_ref[...].astype(jnp.float32)
    out_ref[...] = (diff * diff * w_ref[...]).astype(out_ref.dtype)


# ---------------------------------------------------------------------------
# Wrapper
# ---------------------------------------------------------------------------

def weighted_mse_loss(predictions, targets, weights=None, reduction="mean"):
    """JAX/Pallas equivalent of WeightedMSELoss.forward.

    predictions, targets: same shape [B, ...] (any dtype, streamed natively)
    weights: optional [B]
    reduction: 'none' | 'sum' | 'mean'
    """
    assert predictions.shape == targets.shape
    orig_shape = predictions.shape
    B = int(orig_shape[0])
    F = int(math.prod(orig_shape[1:])) if len(orig_shape) > 1 else 1

    out_dtype = jnp.result_type(predictions.dtype, targets.dtype)
    if weights is not None:
        out_dtype = jnp.result_type(out_dtype, weights.dtype)

    in_itemsize = max(jnp.dtype(predictions.dtype).itemsize,
                      jnp.dtype(targets.dtype).itemsize)

    if reduction == "none":
        # 2 inputs x 2 pipeline buffers + 2 output buffers, per sublane group
        bytes_per_group = B * 128 * (4 * in_itemsize + 2 * jnp.dtype(out_dtype).itemsize)
    else:
        # 2 inputs x 2 pipeline buffers + f32 accumulator, per sublane group
        bytes_per_group = B * 128 * (4 * in_itemsize + 4)

    T, G_pad = _choose_tiling(F, bytes_per_group)
    F_pad = G_pad * 128

    pred2 = predictions.reshape(B, F)
    tgt2 = targets.reshape(B, F)
    if F_pad != F:
        pad = ((0, 0), (0, F_pad - F))
        pred2 = jnp.pad(pred2, pad)      # zeros -> diff^2 == 0, reductions stay exact
        tgt2 = jnp.pad(tgt2, pad)
    pred3 = pred2.reshape(B, G_pad, 128)
    tgt3 = tgt2.reshape(B, G_pad, 128)

    n_blocks = G_pad // T

    if reduction == "none":
        if weights is None:
            w3 = jnp.ones((B, 1, 1), dtype=jnp.float32)
        else:
            w3 = weights.reshape(B, 1, 1).astype(jnp.float32)
        out = pl.pallas_call(
            _wmse_none_kernel,
            out_shape=jax.ShapeDtypeStruct((B, G_pad, 128), out_dtype),
            grid_spec=pltpu.PrefetchScalarGridSpec(
                num_scalar_prefetch=0,
                grid=(n_blocks,),
                in_specs=[
                    pl.BlockSpec((B, T, 128), lambda i: (0, i, 0)),
                    pl.BlockSpec((B, T, 128), lambda i: (0, i, 0)),
                    pl.BlockSpec((B, 1, 1), lambda i: (0, 0, 0)),
                ],
                out_specs=pl.BlockSpec((B, T, 128), lambda i: (0, i, 0)),
            ),
            compiler_params=pltpu.CompilerParams(
                dimension_semantics=("parallel",),
                vmem_limit_bytes=32 * 1024 * 1024),
        )(pred3, tgt3, w3)
        out = out.reshape(B, F_pad)
        if F_pad != F:
            out = out[:, :F]
        return out.reshape(orig_shape)

    # ---- 'sum' / 'mean': per-row partial sums from the kernel, tiny finish in JAX ----
    n_super = 1
    for d in (8, 4, 2, 1):
        if n_blocks % d == 0:
            n_super = d
            break
    n_inner = n_blocks // n_super

    partials = pl.pallas_call(
        _wmse_reduce_kernel,
        out_shape=jax.ShapeDtypeStruct((B, n_super * 128), jnp.float32),
        grid_spec=pltpu.PrefetchScalarGridSpec(
            num_scalar_prefetch=0,
            grid=(n_super, n_inner),
            in_specs=[
                pl.BlockSpec((B, T, 128), lambda s, i: (0, s * n_inner + i, 0)),
                pl.BlockSpec((B, T, 128), lambda s, i: (0, s * n_inner + i, 0)),
            ],
            out_specs=pl.BlockSpec((B, 128), lambda s, i: (0, s)),
            scratch_shapes=[pltpu.VMEM((B, T, 128), jnp.float32)],
        ),
        compiler_params=pltpu.CompilerParams(
            dimension_semantics=("parallel", "arbitrary"),
            vmem_limit_bytes=32 * 1024 * 1024),
    )(pred3, tgt3)

    per_row = jnp.sum(partials, axis=1)                       # (B,) unweighted row sums
    if weights is not None:
        total = jnp.dot(per_row, weights.reshape(B).astype(jnp.float32))
    else:
        total = jnp.sum(per_row)
    if reduction == "mean":
        total = total / float(B * F)
    return total.astype(out_dtype)


# ---------------------------------------------------------------------------
# Reference (pure JAX) for a sanity check
# ---------------------------------------------------------------------------

def _ref_weighted_mse(predictions, targets, weights=None, reduction="mean"):
    mse = (predictions - targets) ** 2
    if weights is not None:
        w = weights.reshape(weights.shape + (1,) * (mse.ndim - weights.ndim))
        mse = mse * w
    if reduction == "none":
        return mse
    if reduction == "sum":
        return jnp.sum(mse)
    return jnp.mean(mse)


if __name__ == "__main__":
    key = jax.random.PRNGKey(0)
    k1, k2, k3 = jax.random.split(key, 3)

    # Small shapes: batch=2, channels=4, spatial=16 (NCHW, like PyTorch).
    predictions = jax.random.normal(k1, (2, 4, 16, 16), dtype=jnp.float32)
    targets = jax.random.normal(k2, (2, 4, 16, 16), dtype=jnp.float32)
    weights = jax.random.uniform(k3, (2,), dtype=jnp.float32) + 0.5

    loss_mean = weighted_mse_loss(predictions, targets, weights, reduction="mean")
    jax.block_until_ready(loss_mean)

    loss_sum = weighted_mse_loss(predictions, targets, weights, reduction="sum")
    loss_mean_nw = weighted_mse_loss(predictions, targets, None, reduction="mean")
    loss_none = weighted_mse_loss(predictions, targets, weights, reduction="none")
    jax.block_until_ready((loss_sum, loss_mean_nw, loss_none))

    ref_mean = _ref_weighted_mse(predictions, targets, weights, "mean")
    ref_sum = _ref_weighted_mse(predictions, targets, weights, "sum")
    ref_mean_nw = _ref_weighted_mse(predictions, targets, None, "mean")
    ref_none = _ref_weighted_mse(predictions, targets, weights, "none")

    assert jnp.allclose(loss_mean, ref_mean, rtol=1e-5, atol=1e-5)
    assert jnp.allclose(loss_sum, ref_sum, rtol=1e-5, atol=1e-4)
    assert jnp.allclose(loss_mean_nw, ref_mean_nw, rtol=1e-5, atol=1e-5)
    assert jnp.allclose(loss_none, ref_none, rtol=1e-5, atol=1e-5)

    print("KERNEL_OK")
</pallas_src>

<mosaic_0001>
module attributes {stable_mosaic.version = 11 : i64} {
  func.func @_wmse_reduce_kernel(%arg0: i32, %arg1: i32, %arg2: memref<2x8x128xf32, #tpu.memory_space<vmem>>, %arg3: memref<2x8x128xf32, #tpu.memory_space<vmem>>, %arg4: memref<2x128xf32, #tpu.memory_space<vmem>>, %arg5: memref<2x8x128xf32, #tpu.memory_space<vmem>>) attributes {dimension_semantics = [#tpu.dimension_semantics<parallel>, #tpu.dimension_semantics<arbitrary>], iteration_bounds = array<i64: 1, 1>, scalar_prefetch = 0 : i64, scratch_operands = 1 : i64, tpu.core_type = #tpu.core_type<tc>, window_params = [{transform_indices = @transform_0, window_bounds = array<i64: 2, 8, 128>}, {transform_indices = @transform_1, window_bounds = array<i64: 2, 8, 128>}, {transform_indices = @transform_2, window_bounds = array<i64: 2, 128>}]} {
    %c0_i32 = arith.constant 0 : i32
    %0 = arith.cmpi eq, %arg1, %c0_i32 : i32
    %1 = arith.extui %0 : i1 to i32
    %c0_i32_0 = arith.constant 0 : i32
    %2 = arith.cmpi ne, %1, %c0_i32_0 : i32
    scf.if %2 {
      %cst = arith.constant 0.000000e+00 : f32
      %13 = vector.broadcast %cst : f32 to vector<2x8x128xf32>
      %c0_14 = arith.constant 0 : index
      %c0_15 = arith.constant 0 : index
      %c0_16 = arith.constant 0 : index
      %14 = vector.load %arg5[%c0_14, %c0_15, %c0_16] : memref<2x8x128xf32, #tpu.memory_space<vmem>>, vector<2x8x128xf32>
      tpu.vector_store %arg5[%c0_14, %c0_15, %c0_16], %13 {strides = array<i32>} : memref<2x8x128xf32, #tpu.memory_space<vmem>>, vector<2x8x128xf32>,
    } else {
    }
    %c0 = arith.constant 0 : index
    %c0_1 = arith.constant 0 : index
    %c0_2 = arith.constant 0 : index
    %3 = vector.load %arg2[%c0, %c0_1, %c0_2] : memref<2x8x128xf32, #tpu.memory_space<vmem>>, vector<2x8x128xf32>
    %c0_3 = arith.constant 0 : index
    %c0_4 = arith.constant 0 : index
    %c0_5 = arith.constant 0 : index
    %4 = vector.load %arg3[%c0_3, %c0_4, %c0_5] : memref<2x8x128xf32, #tpu.memory_space<vmem>>, vector<2x8x128xf32>
    %5 = arith.subf %3, %4 : vector<2x8x128xf32>
    %c0_6 = arith.constant 0 : index
    %c0_7 = arith.constant 0 : index
    %c0_8 = arith.constant 0 : index
    %6 = vector.load %arg5[%c0_6, %c0_7, %c0_8] : memref<2x8x128xf32, #tpu.memory_space<vmem>>, vector<2x8x128xf32>
    %7 = arith.mulf %5, %5 : vector<2x8x128xf32>
    %8 = arith.addf %6, %7 : vector<2x8x128xf32>
    %c0_9 = arith.constant 0 : index
    %c0_10 = arith.constant 0 : index
    %c0_11 = arith.constant 0 : index
    %9 = vector.load %arg5[%c0_9, %c0_10, %c0_11] : memref<2x8x128xf32, #tpu.memory_space<vmem>>, vector<2x8x128xf32>
    tpu.vector_store %arg5[%c0_9, %c0_10, %c0_11], %8 {strides = array<i32>} : memref<2x8x128xf32, #tpu.memory_space<vmem>>, vector<2x8x128xf32>,
    %c0_i32_12 = arith.constant 0 : i32
    %10 = arith.cmpi eq, %arg1, %c0_i32_12 : i32
    %11 = arith.extui %10 : i1 to i32
    %c0_i32_13 = arith.constant 0 : i32
    %12 = arith.cmpi ne, %11, %c0_i32_13 : i32
    scf.if %12 {
      %c0_14 = arith.constant 0 : index
      %c0_15 = arith.constant 0 : index
      %c0_16 = arith.constant 0 : index
      %13 = vector.load %arg5[%c0_14, %c0_15, %c0_16] : memref<2x8x128xf32, #tpu.memory_space<vmem>>, vector<2x8x128xf32>
      %cst = arith.constant dense<0.000000e+00> : vector<2x128xf32>
      %14 = vector.multi_reduction <add>, %13, %cst [1] : vector<2x8x128xf32> to vector<2x128xf32>
      %c0_17 = arith.constant 0 : index
      %c0_18 = arith.constant 0 : index
      %15 = vector.load %arg4[%c0_17, %c0_18] : memref<2x128xf32, #tpu.memory_space<vmem>>, vector<2x128xf32>
      tpu.vector_store %arg4[%c0_17, %c0_18], %14 {strides = array<i32>} : memref<2x128xf32, #tpu.memory_space<vmem>>, vector<2x128xf32>,
    } else {
    }
    return
  }
  func.func @transform_0(%arg0: i32, %arg1: i32) -> (i32, i32, i32) {
    %c1_i32 = arith.constant 1 : i32
    %0 = arith.muli %arg0, %c1_i32 : i32
    %1 = arith.addi %0, %arg1 : i32
    %c0_i32 = arith.constant 0 : i32
    %c0_i32_0 = arith.constant 0 : i32
    %c0_i32_1 = arith.constant 0 : i32
    return %c0_i32, %1, %c0_i32_0 : i32, i32, i32
  }
  func.func @transform_1(%arg0: i32, %arg1: i32) -> (i32, i32, i32) {
    %c1_i32 = arith.constant 1 : i32
    %0 = arith.muli %arg0, %c1_i32 : i32
    %1 = arith.addi %0, %arg1 : i32
    %c0_i32 = arith.constant 0 : i32
    %c0_i32_0 = arith.constant 0 : i32
    %c0_i32_1 = arith.constant 0 : i32
    return %c0_i32, %1, %c0_i32_0 : i32, i32, i32
  }
  func.func @transform_2(%arg0: i32, %arg1: i32) -> (i32, i32) {
    %c0_i32 = arith.constant 0 : i32
    %c0_i32_0 = arith.constant 0 : i32
    return %c0_i32, %arg0 : i32, i32
  }
}

</mosaic_0001>

<bundles_post_ra>
// kernel: tpu_custom_call.1
= control target key start
LH: loop header
LB: loop body
LE: loop exit
PB: predicated region body
PF: predicated region fallthrough
CT: control target
= control target key end

     0   :  { %7 = vsyncpa [#allocation4], 0  ;;  %s240_s0 = inlined_call_operand.hbm [shape: f32[2,8,128], index: 0, kind: input, shape index: {}]   ;;  %s241_s1 = inlined_call_operand.hbm [shape: f32[2,8,128], index: 1, kind: input, shape index: {}]   ;;  %s242_s2 = inlined_call_operand.hbm [shape: f32[2,128], index: 2, kind: output, shape index: {}]  }
   0x1   :  { %8 = vsyncpa [#allocation7], 0 }
   0x2   :  { %9 = vsyncpa [#allocation5], 0  ;;  %s184_s9 = smov [#allocation3]   ;;  %s112_s13 = scalar_lea.hbm %s240_s0, 256 }
   0x3   :  { %s18_s10 = sshll.u32 %s184_s9, 4  ;;  %p113_p0 = scmp.ne.s32.totalorder %s240_s0, %s112_s13  ;;  %s19_s10 = int_to_ptr.vmem [resolvable:$true] %s18_s10 }
   0x4   :  { %p116_p1 = scmp.lt.u32.totalorder %s112_s13, %s240_s0 }
   0x6   :  { %p118_p2 = pnand %p116_p1, %p113_p0 }
   0x8   :  { %121 = shalt.err (!%p118_p2)
}
   0x9   :  { %s122_s18 = scalar_lea.vmem %s19_s10, 256  ;;  %p127_p4 = scmp.lt.s32.totalorder %s19_s10, %s19_s10 }
   0xa   :  { %p123_p3 = scmp.ne.s32.totalorder %s19_s10, %s122_s18  ;;  %p128_p5 = scmp.lt.s32.totalorder %s122_s18, %s122_s18 }
   0xc   :  { %p129_p6 = por %p128_p5, %p127_p4 }
   0xe   :  { %p130_p7 = pnand %p129_p6, %p123_p3 }
  0x10   :  { %133 = shalt.err (!%p130_p7)
}
  0x11   :  { %s185_s19 = smov 128   ;;  %s186_s20 = smov 8  }
  0x12   :  { %24 = dma.hbm_to_vmem [thread:$0]  %s240_s0, 256, %s19_s10, [#allocation4], %s185_s19, %s185_s19, %s186_s20  }
  0x13   :  { %s187_s23 = smov [#allocation6]   ;;  %s134_s27 = scalar_lea.hbm %s241_s1, 256 }
  0x14   :  { %s33_s24 = sshll.u32 %s187_s23, 4  ;;  %p135_p8 = scmp.ne.s32.totalorder %s241_s1, %s134_s27  ;;  %s34_s24 = int_to_ptr.vmem [resolvable:$true] %s33_s24 }
  0x15   :  { %p138_p9 = scmp.lt.u32.totalorder %s134_s27, %s241_s1 }
  0x17   :  { %p140_p10 = pnand %p138_p9, %p135_p8 }
  0x19   :  { %143 = shalt.err (!%p140_p10)
}
  0x1a   :  { %s144_s4 = scalar_lea.vmem %s34_s24, 256  ;;  %p149_p12 = scmp.lt.s32.totalorder %s34_s24, %s34_s24 }
  0x1b   :  { %p145_p11 = scmp.ne.s32.totalorder %s34_s24, %s144_s4  ;;  %p150_p13 = scmp.lt.s32.totalorder %s144_s4, %s144_s4 }
  0x1d   :  { %p151_p0 = por %p150_p13, %p149_p12 }
  0x1f   :  { %p152_p1 = pnand %p151_p0, %p145_p11 }
  0x21   :  { %155 = shalt.err (!%p152_p1)
}
  0x22   :  { %39 = dma.hbm_to_vmem [thread:$0]  %s241_s1, 256, %s34_s24, [#allocation7], %s185_s19, %s185_s19, %s186_s20  }
  0x23   :  { %178 = dma.done.wait [#allocation4], 256  }
  0x24   :  { %179 = vsyncadd [#allocation4], 4294967040 }
  0x25   :  { %180 = dma.done.wait [#allocation7], 256  }
  0x26   :  { %181 = vsyncadd [#allocation7], 4294967040  ;;  %v54_v0 = vld [vmem:[#allocation3] sm:$0xff]  ;;  %v55_v1 = vld [vmem:[#allocation3 + $0x8] sm:$0xff]  ;;  %s188_s1 = smov [#allocation8]   ;;  %vm87_vm0 = vcmask 1041409  }
  0x27   :  { %v56_v2 = vld [vmem:[#allocation6] sm:$0xff]  ;;  %v57_v3 = vld [vmem:[#allocation6 + $0x8] sm:$0xff]  ;;  %s97_s6 = sshll.u32 %s188_s1, 4  ;;  %s98_s6 = int_to_ptr.vmem [resolvable:$true] %s97_s6 }
  0x28   :  { %v58_v4 = vsub.f32 %v54_v0, %v56_v2  ;;  %v59_v5 = vsub.f32 %v55_v1, %v57_v3  ;;  %s156_s7 = scalar_lea.vmem %s98_s6, 32  ;;  %p161_p3 = scmp.lt.s32.totalorder %s98_s6, %s98_s6 }
  0x29   :  { %p157_p2 = scmp.ne.s32.totalorder %s98_s6, %s156_s7  ;;  %p162_p4 = scmp.lt.s32.totalorder %s156_s7, %s156_s7 }
  0x2a   :  { %v62_v6 = vmul.f32 %v58_v4, %v58_v4  ;;  %v63_v7 = vmul.f32 %v59_v5, %v59_v5 }
  0x2b   :  { %p163_p5 = por %p162_p4, %p161_p3 }
  0x2c   :  { %v73_v8 = vrot.slane %v62_v6, 4  ;;  %v79_v9 = vrot.slane %v63_v7, 4 }
  0x2d   :  { %p164_p6 = pnand %p163_p5, %p157_p2 }
  0x2e   :  { %v74_v10 = vadd.f32 %v73_v8, %v62_v6  ;;  %v80_v11 = vadd.f32 %v79_v9, %v63_v7 }
  0x30   :  { %v75_v12 = vrot.slane %v74_v10, 2  ;;  %v81_v13 = vrot.slane %v80_v11, 2 }
  0x32   :  { %v76_v14 = vadd.f32 %v75_v12, %v74_v10  ;;  %v82_v15 = vadd.f32 %v81_v13, %v80_v11 }
  0x34   :  { %v77_v16 = vrot.slane %v76_v14, 1  ;;  %v83_v17 = vrot.slane %v82_v15, 1 }
  0x36   :  { %v78_v18 = vadd.f32 %v77_v16, %v76_v14  ;;  %v84_v19 = vadd.f32 %v83_v17, %v82_v15 }
  0x38   :  { %v88_v20 = vsel %vm87_vm0, %v84_v19, %v78_v18 }
  0x39   :  { %90 = vst [vmem:[#allocation8] sm:$0x3] %v88_v20 }
  0x3a   :  { %167 = shalt.err (!%p164_p6)
}
  0x3b   :  { %s168_s10 = scalar_lea.hbm %s242_s2, 32 }
  0x3c   :  { %p169_p7 = scmp.ne.s32.totalorder %s242_s2, %s168_s10  ;;  %p172_p8 = scmp.lt.u32.totalorder %s168_s10, %s242_s2 }
  0x3e   :  { %p174_p9 = pnand %p172_p8, %p169_p7 }
  0x40   :  { %177 = shalt.err (!%p174_p9)
}
  0x41   :  { %100 = dma.vmem_to_hbm [thread:$0]  %s98_s6, 32, %s242_s2, [#allocation5]  }
  0x42   :  { %182 = dma.done.wait [#allocation5], 32  }
  0x43   :  { %183 = vsyncadd [#allocation5], 4294967264 }
  0x44   :  { %104 = vsyncpa [#allocation4], 1 }
  0x45   :  { %105 = vsyncpa [#allocation7], 1 }
  0x46   :  { %106 = vsyncpa [#allocation5], 1 }

</bundles_post_ra>
